<compile_context>
chip_gen: v7x
topology: tpu7x:2x2x1
jax: 0.10.0
libtpu: 0.0.40
codegen_flags: <defaults>
</compile_context>

<pallas_src>
import functools

import jax
import jax.numpy as jnp
from jax.experimental import pallas as pl
from jax.experimental.pallas import tpu as pltpu


_LN_EPS = 1e-5  # torch.nn.LayerNorm default


# ---------------------------------------------------------------------------
# shared helpers
# ---------------------------------------------------------------------------
def _layernorm(x, gamma, beta):
    mu = jnp.mean(x, axis=-1, keepdims=True)
    xc = x - mu
    var = jnp.mean(xc * xc, axis=-1, keepdims=True)
    inv = jax.lax.rsqrt(var + _LN_EPS)
    return xc * inv * gamma + beta


def _compiler_params():
    return pltpu.CompilerParams(
        dimension_semantics=("parallel",),
        vmem_limit_bytes=32 * 1024 * 1024,
    )


# ---------------------------------------------------------------------------
# Kernel 1: GraphSFWT double graph convolution  relu(adj @ relu(adj @ x))
#           x is kept as (N, T*D) so the lane axis is 128-dense and the grid
#           tiles the T*D axis (column blocks are independent -> "parallel").
# ---------------------------------------------------------------------------
def _graph_conv_kernel(adj_ref, x_ref, o_ref):
    adj = adj_ref[...]
    g1 = jnp.maximum(
        jnp.dot(adj, x_ref[...], preferred_element_type=jnp.float32), 0.0)
    g2 = jnp.maximum(
        jnp.dot(adj, g1, preferred_element_type=jnp.float32), 0.0)
    o_ref[...] = g2.astype(o_ref.dtype)


def graph_double_conv(adj, x_flat):
    n, l = x_flat.shape
    lt = 128 if l % 128 == 0 else l
    return pl.pallas_call(
        _graph_conv_kernel,
        out_shape=jax.ShapeDtypeStruct((n, l), jnp.float32),
        grid_spec=pltpu.PrefetchScalarGridSpec(
            num_scalar_prefetch=0,
            grid=(l // lt,),
            in_specs=[
                pl.BlockSpec((n, n), lambda j: (0, 0)),
                pl.BlockSpec((n, lt), lambda j: (0, j)),
            ],
            out_specs=pl.BlockSpec((n, lt), lambda j: (0, j)),
        ),
        compiler_params=_compiler_params(),
    )(adj, x_flat)


# ---------------------------------------------------------------------------
# Kernel 2: GraphSFWT 3-layer MLP + residual + STTransformerBlock.norm1
#           operates on (M, D) rows, M = N*T (MXU-friendly M), grid over rows.
# ---------------------------------------------------------------------------
def _sfwt_mlp_kernel(g_ref, q_ref, w1_ref, b1_ref, w2_ref, b2_ref,
                     w3_ref, b3_ref, gam_ref, bet_ref, o_ref):
    h = jnp.dot(g_ref[...], w1_ref[...],
                preferred_element_type=jnp.float32) + b1_ref[...]
    h = jnp.maximum(h, 0.0)
    h = jnp.dot(h, w2_ref[...],
                preferred_element_type=jnp.float32) + b2_ref[...]
    h = jnp.maximum(h, 0.0)
    h = jnp.dot(h, w3_ref[...],
                preferred_element_type=jnp.float32) + b3_ref[...]
    x = h + q_ref[...]
    o_ref[...] = _layernorm(x, gam_ref[...], bet_ref[...]).astype(o_ref.dtype)


def sfwt_mlp_residual_norm(g2d, x2d, p):
    m, d = g2d.shape
    h1 = p["w1"].shape[1]
    h2 = p["w2"].shape[1]
    tm = 128 if m % 128 == 0 else m
    full = lambda i: (0, 0)
    row = lambda i: (i, 0)
    return pl.pallas_call(
        _sfwt_mlp_kernel,
        out_shape=jax.ShapeDtypeStruct((m, d), jnp.float32),
        grid_spec=pltpu.PrefetchScalarGridSpec(
            num_scalar_prefetch=0,
            grid=(m // tm,),
            in_specs=[
                pl.BlockSpec((tm, d), row),
                pl.BlockSpec((tm, d), row),
                pl.BlockSpec((d, h1), full), pl.BlockSpec((1, h1), full),
                pl.BlockSpec((h1, h2), full), pl.BlockSpec((1, h2), full),
                pl.BlockSpec((h2, d), full), pl.BlockSpec((1, d), full),
                pl.BlockSpec((1, d), full), pl.BlockSpec((1, d), full),
            ],
            out_specs=pl.BlockSpec((tm, d), row),
        ),
        compiler_params=_compiler_params(),
    )(g2d, x2d, p["w1"], p["b1"], p["w2"], p["b2"], p["w3"], p["b3"],
      p["blk_g1"], p["blk_b1"])


# ---------------------------------------------------------------------------
# Kernel 3: temporal multi-head self-attention + residual + TT.norm1
#           grid over node blocks ("parallel"); QKV projections are one
#           (M, D) @ (D, D) matmul each using block-diagonal per-head weights.
# ---------------------------------------------------------------------------
def _tattn_kernel(x_ref, wq_ref, wk_ref, wv_ref, wo_ref, bo_ref,
                  gam_ref, bet_ref, o_ref, *, heads):
    nb, t, d = x_ref.shape
    hd = d // heads
    x3 = x_ref[...].astype(jnp.float32)          # (NB, T, D)
    x2 = x3.reshape(nb * t, d)                   # merge leading dims only

    q = jnp.dot(x2, wq_ref[...], preferred_element_type=jnp.float32).reshape(nb, t, d)
    k = jnp.dot(x2, wk_ref[...], preferred_element_type=jnp.float32).reshape(nb, t, d)
    v = jnp.dot(x2, wv_ref[...], preferred_element_type=jnp.float32).reshape(nb, t, d)

    scale = 1.0 / (float(d) ** 0.5)              # energy / sqrt(embed_size)
    head_outs = []
    for h in range(heads):
        lo = h * hd
        qh = q[:, :, lo:lo + hd]
        kh = k[:, :, lo:lo + hd]
        vh = v[:, :, lo:lo + hd]
        s = jnp.einsum("nqd,nkd->nqk", qh, kh,
                       preferred_element_type=jnp.float32) * scale
        s = jnp.clip(s, -5.0, 5.0)
        pr = jnp.exp(s - jnp.max(s, axis=-1, keepdims=True))
        a = pr / jnp.sum(pr, axis=-1, keepdims=True)
        head_outs.append(jnp.einsum("nqk,nkd->nqd", a, vh,
                                    preferred_element_type=jnp.float32))
    attn = jnp.concatenate(head_outs, axis=-1).reshape(nb * t, d)
    attn = jnp.dot(attn, wo_ref[...],
                   preferred_element_type=jnp.float32) + bo_ref[...]
    y = _layernorm(attn + x2, gam_ref[...], bet_ref[...])
    o_ref[...] = y.reshape(nb, t, d).astype(o_ref.dtype)


def temporal_attention_norm(x1_3d, p, heads):
    n, t, d = x1_3d.shape
    nb = 8 if n % 8 == 0 else n
    full = lambda i: (0, 0)
    kernel = functools.partial(_tattn_kernel, heads=heads)
    return pl.pallas_call(
        kernel,
        out_shape=jax.ShapeDtypeStruct((n, t, d), jnp.float32),
        grid_spec=pltpu.PrefetchScalarGridSpec(
            num_scalar_prefetch=0,
            grid=(n // nb,),
            in_specs=[
                pl.BlockSpec((nb, t, d), lambda i: (i, 0, 0)),
                pl.BlockSpec((d, d), full), pl.BlockSpec((d, d), full),
                pl.BlockSpec((d, d), full), pl.BlockSpec((d, d), full),
                pl.BlockSpec((1, d), full),
                pl.BlockSpec((1, d), full), pl.BlockSpec((1, d), full),
            ],
            out_specs=pl.BlockSpec((nb, t, d), lambda i: (i, 0, 0)),
        ),
        compiler_params=_compiler_params(),
    )(x1_3d, p["wqB"], p["wkB"], p["wvB"], p["wo"], p["bo"],
      p["tt_g1"], p["tt_b1"])


# ---------------------------------------------------------------------------
# Kernel 4: TTransformer feed-forward + TT.norm2, then block residual + norm2
# ---------------------------------------------------------------------------
def _ffn_norms_kernel(xa_ref, x1_ref, wf1_ref, bf1_ref, wf2_ref, bf2_ref,
                      g1_ref, b1_ref, g2_ref, b2_ref, o_ref):
    xa = xa_ref[...]
    h = jnp.dot(xa, wf1_ref[...],
                preferred_element_type=jnp.float32) + bf1_ref[...]
    h = jnp.maximum(h, 0.0)
    ff = jnp.dot(h, wf2_ref[...],
                 preferred_element_type=jnp.float32) + bf2_ref[...]
    tt = _layernorm(ff + xa, g1_ref[...], b1_ref[...])
    x2 = _layernorm(tt + x1_ref[...], g2_ref[...], b2_ref[...])
    o_ref[...] = x2.astype(o_ref.dtype)


def ffn_and_norms(xa2d, x1_2d, p):
    m, d = xa2d.shape
    f = p["wf1"].shape[1]
    tm = 128 if m % 128 == 0 else m
    full = lambda i: (0, 0)
    row = lambda i: (i, 0)
    return pl.pallas_call(
        _ffn_norms_kernel,
        out_shape=jax.ShapeDtypeStruct((m, d), jnp.float32),
        grid_spec=pltpu.PrefetchScalarGridSpec(
            num_scalar_prefetch=0,
            grid=(m // tm,),
            in_specs=[
                pl.BlockSpec((tm, d), row), pl.BlockSpec((tm, d), row),
                pl.BlockSpec((d, f), full), pl.BlockSpec((1, f), full),
                pl.BlockSpec((f, d), full), pl.BlockSpec((1, d), full),
                pl.BlockSpec((1, d), full), pl.BlockSpec((1, d), full),
                pl.BlockSpec((1, d), full), pl.BlockSpec((1, d), full),
            ],
            out_specs=pl.BlockSpec((tm, d), row),
        ),
        compiler_params=_compiler_params(),
    )(xa2d, x1_2d, p["wf1"], p["bf1"], p["wf2"], p["bf2"],
      p["tt_g2"], p["tt_b2"], p["blk_g2"], p["blk_b2"])


# ---------------------------------------------------------------------------
# Encoder forward (Pallas path)
# ---------------------------------------------------------------------------
def st_block_forward(x, p, heads):
    n, t, d = x.shape
    x_flat = x.reshape(n, t * d)                       # lane-dense, contiguous
    g = graph_double_conv(p["adj"], x_flat)            # (N, T*D)
    g2d = g.reshape(n * t, d)
    x2d = x.reshape(n * t, d)
    x1 = sfwt_mlp_residual_norm(g2d, x2d, p)           # (N*T, D), blk norm1 done
    xa = temporal_attention_norm(x1.reshape(n, t, d), p, heads)   # (N, T, D)
    x2 = ffn_and_norms(xa.reshape(n * t, d), x1, p)    # (N*T, D)
    return x2.reshape(n, t, d)


def encoder_forward(x, layer_params, heads):
    # Encoder.forward: out = dropout(x); for each layer: out = layer(out,out,out,t)
    # Dropout layers are identity in eval/inference mode; `t`/time_num is unused
    # by the module's forward.
    out = x
    for p in layer_params:
        out = st_block_forward(out, p, heads)
    return out


# ---------------------------------------------------------------------------
# Plain-JAX reference mirroring the PyTorch module
# ---------------------------------------------------------------------------
def _layernorm_ref(x, g, b):
    mu = x.mean(-1, keepdims=True)
    var = ((x - mu) ** 2).mean(-1, keepdims=True)
    return (x - mu) / jnp.sqrt(var + _LN_EPS) * g + b


def _graph_sfwt_ref(x, p):
    o1 = jax.nn.relu(jnp.einsum("nm,mtd->ntd", p["adj"], x))
    o2 = jax.nn.relu(jnp.einsum("nm,mtd->ntd", p["adj"], o1))
    h = jax.nn.relu(o2 @ p["w1"] + p["b1"])
    h = jax.nn.relu(h @ p["w2"] + p["b2"])
    return h @ p["w3"] + p["b3"]


def _tself_attention_ref(v, k, q, p, heads):
    n, t, c = q.shape
    hd = c // heads
    vr = jnp.einsum("nthd,de->nthe", v.reshape(n, t, heads, hd), p["wv_h"])
    kr = jnp.einsum("nthd,de->nthe", k.reshape(n, t, heads, hd), p["wk_h"])
    qr = jnp.einsum("nthd,de->nthe", q.reshape(n, t, heads, hd), p["wq_h"])
    energy = jnp.einsum("nqhd,nkhd->nqkh", qr, kr)
    att = jax.nn.softmax(jnp.clip(energy / jnp.sqrt(float(c)), -5.0, 5.0), axis=2)
    out = jnp.einsum("nqkh,nkhd->nqhd", att, vr).reshape(n, t, c)
    return out @ p["wo"] + p["bo"]


def _ttransformer_ref(v, k, q, p, heads):
    att = _tself_attention_ref(v, k, q, p, heads)
    x = _layernorm_ref(att + q, p["tt_g1"], p["tt_b1"])
    ff = jax.nn.relu(x @ p["wf1"] + p["bf1"]) @ p["wf2"] + p["bf2"]
    return _layernorm_ref(ff + x, p["tt_g2"], p["tt_b2"])


def _st_block_ref(x, p, heads):
    s = _graph_sfwt_ref(x, p)
    x1 = _layernorm_ref(s + x, p["blk_g1"], p["blk_b1"])
    tt = _ttransformer_ref(x1, x1, x1, p, heads)
    return _layernorm_ref(tt + x1, p["blk_g2"], p["blk_b2"])


def encoder_reference(x, layer_params, heads):
    out = x
    for p in layer_params:
        out = _st_block_ref(out, p, heads)
    return out


# ---------------------------------------------------------------------------
# Parameter construction
# ---------------------------------------------------------------------------
def _block_diag(w, heads):
    hd = w.shape[0]
    d = heads * hd
    out = jnp.zeros((d, d), w.dtype)
    for h in range(heads):
        out = out.at[h * hd:(h + 1) * hd, h * hd:(h + 1) * hd].set(w)
    return out


def init_layer_params(key, adj, embed_size, heads, hidden_c, hidden_c_2,
                      forward_expansion):
    d = embed_size
    hd = d // heads
    f = forward_expansion * d
    ks = jax.random.split(key, 24)

    def lin(k, fi, fo):
        return jax.random.normal(k, (fi, fo), jnp.float32) / jnp.sqrt(float(fi))

    def bias(k, n):
        return 0.05 * jax.random.normal(k, (1, n), jnp.float32)

    def gamma(k):
        return 1.0 + 0.1 * jax.random.normal(k, (1, d), jnp.float32)

    def beta(k):
        return 0.05 * jax.random.normal(k, (1, d), jnp.float32)

    p = {
        "adj": adj,
        # GraphSFWT MLP (weights stored (in, out) so kernels do x @ W)
        "w1": lin(ks[0], d, hidden_c), "b1": bias(ks[1], hidden_c),
        "w2": lin(ks[2], hidden_c, hidden_c_2), "b2": bias(ks[3], hidden_c_2),
        "w3": lin(ks[4], hidden_c_2, d), "b3": bias(ks[5], d),
        # STTransformerBlock norms
        "blk_g1": gamma(ks[6]), "blk_b1": beta(ks[7]),
        "blk_g2": gamma(ks[8]), "blk_b2": beta(ks[9]),
        # TSelfAttention per-head projections (shared across heads, no bias)
        "wq_h": lin(ks[10], hd, hd),
        "wk_h": lin(ks[11], hd, hd),
        "wv_h": lin(ks[12], hd, hd),
        "wo": lin(ks[13], d, d), "bo": bias(ks[14], d),
        # TTransformer norms
        "tt_g1": gamma(ks[15]), "tt_b1": beta(ks[16]),
        "tt_g2": gamma(ks[17]), "tt_b2": beta(ks[18]),
        # TTransformer feed-forward
        "wf1": lin(ks[19], d, f), "bf1": bias(ks[20], f),
        "wf2": lin(ks[21], f, d), "bf2": bias(ks[22], d),
    }
    # Block-diagonal (D, D) forms of the shared per-head projections: lets the
    # kernel run one lane-dense (M, D) @ (D, D) MXU matmul per projection
    # instead of per-head (.., hd) @ (hd, hd) matvecs.
    p["wqB"] = _block_diag(p["wq_h"], heads)
    p["wkB"] = _block_diag(p["wk_h"], heads)
    p["wvB"] = _block_diag(p["wv_h"], heads)
    return p


if __name__ == "__main__":
    jax.config.update("jax_default_matmul_precision", "highest")

    # Small shapes consistent with the Encoder module.
    num_nodes = 16            # N (adj is N x N)
    t_len = 8                 # temporal length T
    embed_size = 32           # D
    heads = 4
    num_layers = 2
    forward_expansion = 4
    hidden_c, hidden_c_2 = 1024, 512   # GraphSFWT defaults in the module

    key = jax.random.PRNGKey(0)
    k_x, k_adj, *k_layers = jax.random.split(key, 2 + num_layers)

    x = jax.random.normal(k_x, (num_nodes, t_len, embed_size), dtype=jnp.float32)
    adj = jax.random.uniform(k_adj, (num_nodes, num_nodes),
                             dtype=jnp.float32) / num_nodes

    layer_params = [
        init_layer_params(k, adj, embed_size, heads, hidden_c, hidden_c_2,
                          forward_expansion)
        for k in k_layers
    ]

    t = 0  # TODO(synk): `t` / time_num is accepted but unused by the module's forward.

    out = encoder_forward(x, layer_params, heads)
    out = jax.block_until_ready(out)

    ref = encoder_reference(x, layer_params, heads)
    ref = jax.block_until_ready(ref)

    assert out.shape == (num_nodes, t_len, embed_size)
    assert jnp.allclose(out, ref, atol=2e-3, rtol=2e-3), (
        "Pallas output mismatch vs JAX reference: max abs err = "
        f"{float(jnp.max(jnp.abs(out - ref)))}"
    )

    print("KERNEL_OK")
</pallas_src>

<mosaic_0001>
module attributes {stable_mosaic.version = 11 : i64} {
  func.func @_graph_conv_kernel(%arg0: i32, %arg1: memref<16x16xf32, #tpu.memory_space<vmem>>, %arg2: memref<16x128xf32, #tpu.memory_space<vmem>>, %arg3: memref<16x128xf32, #tpu.memory_space<vmem>>) attributes {dimension_semantics = [#tpu.dimension_semantics<parallel>], iteration_bounds = array<i64: 2>, scalar_prefetch = 0 : i64, scratch_operands = 0 : i64, tpu.core_type = #tpu.core_type<tc>, window_params = [{pipeline_mode = #tpu.pipeline_mode<synchronous>, transform_indices = @transform_0, window_bounds = array<i64: 16, 16>}, {transform_indices = @transform_1, window_bounds = array<i64: 16, 128>}, {transform_indices = @transform_2, window_bounds = array<i64: 16, 128>}]} {
    %c0 = arith.constant 0 : index
    %c0_0 = arith.constant 0 : index
    %0 = vector.load %arg1[%c0, %c0_0] : memref<16x16xf32, #tpu.memory_space<vmem>>, vector<16x16xf32>
    %c0_1 = arith.constant 0 : index
    %c0_2 = arith.constant 0 : index
    %1 = vector.load %arg2[%c0_1, %c0_2] : memref<16x128xf32, #tpu.memory_space<vmem>>, vector<16x128xf32>
    %cst = arith.constant dense<0.000000e+00> : vector<16x128xf32>
    %2 = tpu.matmul %0, %1, %cst {dimension_numbers = #tpu.dot_dimension_numbers<[1], [0], [0], [1], [0, 0, 1, 1], [], []>, precision = #tpu.contract_precision<fp32>} : vector<16x16xf32>, vector<16x128xf32>, vector<16x128xf32> -> vector<16x128xf32>
    %cst_3 = arith.constant 0.000000e+00 : f32
    %3 = vector.broadcast %cst_3 : f32 to vector<16x128xf32>
    %4 = arith.maximumf %2, %3 : vector<16x128xf32>
    %cst_4 = arith.constant dense<0.000000e+00> : vector<16x128xf32>
    %5 = tpu.matmul %0, %4, %cst_4 {dimension_numbers = #tpu.dot_dimension_numbers<[1], [0], [0], [1], [0, 0, 1, 1], [], []>, precision = #tpu.contract_precision<fp32>} : vector<16x16xf32>, vector<16x128xf32>, vector<16x128xf32> -> vector<16x128xf32>
    %cst_5 = arith.constant 0.000000e+00 : f32
    %6 = vector.broadcast %cst_5 : f32 to vector<16x128xf32>
    %7 = arith.maximumf %5, %6 : vector<16x128xf32>
    %c0_6 = arith.constant 0 : index
    %c0_7 = arith.constant 0 : index
    %8 = vector.load %arg3[%c0_6, %c0_7] : memref<16x128xf32, #tpu.memory_space<vmem>>, vector<16x128xf32>
    tpu.vector_store %arg3[%c0_6, %c0_7], %7 {strides = array<i32>} : memref<16x128xf32, #tpu.memory_space<vmem>>, vector<16x128xf32>,
    return
  }
  func.func @transform_0(%arg0: i32) -> (i32, i32) {
    %c0_i32 = arith.constant 0 : i32
    %c0_i32_0 = arith.constant 0 : i32
    %c0_i32_1 = arith.constant 0 : i32
    return %c0_i32, %c0_i32_0 : i32, i32
  }
  func.func @transform_1(%arg0: i32) -> (i32, i32) {
    %c0_i32 = arith.constant 0 : i32
    %c0_i32_0 = arith.constant 0 : i32
    return %c0_i32, %arg0 : i32, i32
  }
  func.func @transform_2(%arg0: i32) -> (i32, i32) {
    %c0_i32 = arith.constant 0 : i32
    %c0_i32_0 = arith.constant 0 : i32
    return %c0_i32, %arg0 : i32, i32
  }
}

</mosaic_0001>

<bundles_post_ra>
// kernel: tpu_custom_call.1
= control target key start
LH: loop header
LB: loop body
LE: loop exit
PB: predicated region body
PF: predicated region fallthrough
CT: control target
= control target key end

     0   :  { %7 = vsyncpa [#allocation3], 0  ;;  %s1975_s0 = inlined_call_operand.hbm [shape: f32[16,16], index: 0, kind: input, shape index: {}]   ;;  %s1976_s1 = inlined_call_operand.hbm [shape: f32[16,256], index: 1, kind: input, shape index: {}]   ;;  %s1977_s2 = inlined_call_operand.hbm [shape: f32[16,256], index: 2, kind: output, shape index: {}]  }
   0x1   :  { %8 = vsyncpa [#allocation6], 0 }
   0x2   :  { %10 = vsyncpa [#allocation6 + $0x1], 0 }
   0x3   :  { %11 = vsyncpa [#allocation4], 0 }
   0x4   :  { %13 = vsyncpa [#allocation4 + $0x1], 0  ;;  %s1726_s9 = smov 0   ;;  %s1728_s10 = smov 0  }
   0x5   :  { %s1730_s11 = smov 0   ;;  %s1732_s12 = smov 0  }
   0x6 LB: > { %s1747_s13 = sadd.s32 4294967295, %s1700_s12   ;;  %s1295_s14 = sadd.s32 4294967294, %s1700_s12   ;;  %s1700_s12 = sphi %s1732_s12, %s2001_s12   ;;  %s1696_s11 = sphi %s1730_s11, %s2000_s11   ;;  %s1692_s10 = sphi %s1728_s10, %s1999_s10   ;;  %s1688_s9 = sphi %s1726_s9, %s1998_s9  }
   0x7   : > { %s1751_s15 = sadd.s32 1, %s1700_s12   ;;  %s47_s16 = sadd.s32 1, %s1696_s11 }
   0x8   : > { %s44_s17 = ssub.s32 %s1700_s12, %s1751_s15  ;;  %p54_p0 = scmp.ne.s32.totalorder %s1696_s11, %s1692_s10 }
   0x9   : > { %p45_p1 = scmp.eq.s32.totalorder %s44_s17, 0  ;;  %p55_p2 = scmp.eq.s32.totalorder %s1700_s12, 0 }
   0xa   : > { %p60_p3 = scmp.ne.s32.totalorder %s1692_s10, %s1688_s9  ;;  %p1978_p4 = scmp.eq.s32.totalorder %s1747_s13, 0 }
   0xb   : > { %s1763_s18 = scalar_select %p45_p1, %s1696_s11, %s47_s16  }
   0xc   : > { %p1765_p5 = por %p55_p2, %p54_p0  ;;  %p1771_p6 = por %p1978_p4, %p60_p3 }
   0xd   : > { %p84_p7 = scmp.eq.s32.totalorder %s1747_s13, 1  ;;  %p90_p8 = scmp.eq.s32.totalorder %s1295_s14, 1 }
   0xe   : > { %s1982_s19 = scalar_select %p1765_p5, 1, 0 }
   0xf   : > { %s1983_s20 = scalar_select %p1771_p6, 1, 0 }
  0x10   : > { %p1296_p9 = scmp.ge.s32.totalorder %s1700_s12, 1  ;;  %p97_p10 = scmp.lt.s32.totalorder %s1700_s12, 3 }
  0x11   : > { %p1778_p11 = por %p84_p7, %p54_p0  ;;  %p1782_p12 = por %p90_p8, %p60_p3 }
  0x12   : > { %p1786_p13 = pnand %p1296_p9, %p97_p10  ;;  %s1702_s24 = smov [#allocation2]  }
  0x13   : > { %s1984_s21 = scalar_select %p1778_p11, 1, 0 }
  0x14   : > { %s1985_s22 = scalar_select %p1782_p12, 1, 0 }
  0x15   : > { %s1986_s23 = scalar_select %p1786_p13, 1, 0 }
  0x16   : > { %p1517_p1 = pneg %p1786_p13  ;;  %s109_s25 = sshll.u32 %s1702_s24, 4  ;;  %s110_s25 = int_to_ptr.vmem [resolvable:$true] %s109_s25 }
  0x17   : > { %s123_s27 = sand.u32 1, %s1696_s11   ;;  %s1572_s30 = scalar_lea.hbm %s1975_s0, 256 }
  0x18   : > { %p1794_p2 = pnand %p1517_p1, %p1978_p4  ;;  %p1573_p7 = scmp.ne.s32.totalorder %s1975_s0, %s1572_s30 }
  0x19   : > { %p1579_p1 = scmp.lt.u32.totalorder %s1572_s30, %s1975_s0 }
  0x1a   : > { %p1574_p8 = pneg %p1794_p2 }
  0x1c   : > { %p1575_p9 = pnand %p1574_p8, %p1573_p7 }
  0x1e   : > { %p1576_p10 = pneg %p1575_p9 }
  0x20   : > { %p1581_p4 = pnand %p1579_p1, %p1576_p10 }
  0x22   : > { %1584 = shalt.err (!%p1581_p4)
}
  0x23   : > { %s1585_s7 = scalar_lea.vmem %s110_s25, 256  ;;  %p1593_p11 = scmp.lt.s32.totalorder %s110_s25, %s110_s25 }
  0x24   : > { %p1586_p0 = scmp.ne.s32.totalorder %s110_s25, %s1585_s7  ;;  %p1594_p6 = scmp.lt.s32.totalorder %s1585_s7, %s1585_s7 }
  0x26   : > { %p1588_p3 = pnand %p1586_p0, %p1574_p8  ;;  %p1595_p13 = por %p1594_p6, %p1593_p11 }
  0x28   : > { %p1589_p12 = pneg %p1588_p3 }
  0x2a   : > { %p1596_p5 = pnand %p1595_p13, %p1589_p12 }
  0x2c   : > { %1599 = shalt.err (!%p1596_p5)
}
  0x2d   : > { %s1703_s8 = smov 128   ;;  %s1704_s14 = smov 8  }
  0x2e   : > { %1520 = dma.hbm_to_vmem [thread:$0]  (!%p1794_p2), %s1975_s0, 256, %s110_s25, [#allocation3], %s1703_s8, %s1703_s8, %s1704_s14  }
  0x2f   : > { %p1988_p4 = scmp.ne.s32.totalorder %s1982_s19, 0  ;;  %p1989_p0 = scmp.lt.s32.totalorder %s1700_s12, 2 }
  0x30   : > { %s1299_s28 = sshll.u32 %s123_s27, 4  ;;  %s1300_s29 = sshll.u32 %s1700_s12, 7 }
  0x31   : > { %p1824_p3 = pnand %p1989_p0, %p1988_p4  ;;  %s1832_s26 = scalar_lea.hbm %s1976_s1, %s1300_s29 }
  0x32   : > { %s127_s25 = scalar_lea.vmem [#allocation5], %s1299_s28  ;;  %s1836_s4 = scalar_lea.sflag [#allocation6], %s123_s27 }
  0x33   : > { %s133_s19 = sshll.u32 %s127_s25, 4  ;;  %s1600_s5 = scalar_lea.hbm %s1832_s26, 256  ;;  %s1834_s19 = int_to_ptr.vmem [resolvable:$true] %s133_s19 }
  0x34   : > { %p1601_p5 = scmp.ne.s32.totalorder %s1832_s26, %s1600_s5  ;;  %p1602_p6 = pneg %p1824_p3 }
  0x35   : > { %s1605_s16 = scalar_lea.hbm %s1976_s1, 512  ;;  %p1606_p13 = scmp.lt.u32.totalorder %s1832_s26, %s1976_s1 }
  0x36   : > { %p1603_p11 = pnand %p1602_p6, %p1601_p5  ;;  %p1607_p2 = scmp.lt.u32.totalorder %s1605_s16, %s1600_s5 }
  0x37   : > { %p1609_p8 = scmp.lt.u32.totalorder %s1600_s5, %s1832_s26 }
  0x38   : > { %p1604_p12 = pneg %p1603_p11  ;;  %p1608_p7 = por %p1607_p2, %p1606_p13 }
  0x3a   : > { %p1610_p9 = por %p1609_p8, %p1608_p7 }
  0x3c   : > { %p1611_p10 = pnand %p1610_p9, %p1604_p12 }
  0x3e   : > { %1614 = shalt.err (!%p1611_p10)
}
  0x3f   : > { %s1615_s27 = scalar_lea.vmem %s1834_s19, 256  ;;  %s1705_s28 = smov [#allocation5]  }
  0x40   : > { %p1616_p1 = scmp.ne.s32.totalorder %s1834_s19, %s1615_s27  ;;  %s1620_s30 = sshll.u32 %s1705_s28, 4  ;;  %s1621_s30 = int_to_ptr.vmem [resolvable:$false] %s1620_s30 }
  0x41   : > { %s1622_s3 = scalar_lea.vmem %s1621_s30, 512  ;;  %p1623_p5 = scmp.lt.s32.totalorder %s1834_s19, %s1621_s30 }
  0x42   : > { %p1618_p4 = pnand %p1616_p1, %p1602_p6  ;;  %p1624_p11 = scmp.lt.s32.totalorder %s1622_s3, %s1615_s27 }
  0x44   : > { %p1619_p0 = pneg %p1618_p4  ;;  %p1625_p13 = por %p1624_p11, %p1623_p5 }
  0x46   : > { %p1626_p2 = pnand %p1625_p13, %p1619_p0 }
  0x48   : > { %1629 = shalt.err (!%p1626_p2)
}
  0x49   : > { %s1706_s25 = smov 256   ;;  %p1991_p6 = scmp.ne.s32.totalorder %s1986_s23, 0 }
  0x4a   : > { %1524 = dma.hbm_to_vmem [thread:$0]  (!%p1824_p3), %s1832_s26, 256, %s1834_s19, %s1836_s4, %s1706_s25, %s1703_s8, %s1704_s14  }
  0x4b   : > { %145 = sbr.rel (%p1991_p6) target bundleno = 635 (0x27b), region = 28  ;;  %p1992_p12 = scmp.eq.s32.totalorder (!%p1991_p6), %s1747_s13, 0 }
  0x52   : > { %1675 = dma.done.wait (%p1992_p12), [#allocation3], 256   ;;  %p1993_p7 = pmov %p1992_p12 }
  0x53   : > { %s1873_s5 = sand.u32 1, %s1692_s10   ;;  %p1994_p3 = scmp.ne.s32.totalorder %s1983_s20, 0 }
  0x54   : > { %1677 = vsyncadd (%p1993_p7), [#allocation3], 4294967040  ;;  %s1303_s24 = sshll.u32 %s1873_s5, 4  ;;  %s152_s6 = scalar_lea.sflag [#allocation6], %s1873_s5 }
  0x55   : > { %s155_s8 = scalar_lea.vmem [#allocation5], %s1303_s24 }
  0x56   : > { %1679 = dma.done.wait (%p1994_p3), %s152_s6, 256  }
  0x57   : > { %1681 = vsyncadd (%p1994_p3), %s152_s6, 4294967040  ;;  %vm180_vm0 = vcmask 130048   ;;  %v178_v0 = vld [vmem:[%s155_s8] sm:$0xff]  ;;  %v179_v1 = vld [vmem:[%s155_s8 + $0x8] sm:$0xff]  ;;  %s175_s20 = scalar_lea.vmem [#allocation7], %s1303_s24  ;;  %s1306_s14 = sshll.u32 %s1747_s13, 7 }
  0x58   : > { %v176_v2 = vld [vmem:[#allocation2] sm:$0xff]  ;;  %v188_v3 = vand.u32 4294901760, %v178_v0  ;;  %v191_v4 = vand.u32 4294901760, %v179_v1  ;;  %v177_v5 = vld [vmem:[#allocation2 + $0x8] sm:$0xff]  ;;  %s1210_s23 = sshll.u32 %s175_s20, 4  ;;  %s1931_s4 = scalar_lea.hbm %s1977_s2, %s1306_s14  ;;  %s1926_s23 = int_to_ptr.vmem [resolvable:$true] %s1210_s23 }
  0x59   : > { %v182_v6 = vsel %vm180_vm0, %v176_v2, 0  ;;  %v185_v7 = vsel %vm180_vm0, %v177_v5, 0  ;;  %s1198_s7 = scalar_lea.sflag [#allocation4], %s1873_s5  ;;  %s1630_s16 = scalar_lea.vmem %s1926_s23, 256 }
  0x5a   : > { %v1883_v8 = vand.u32 4294901760, %v182_v6  ;;  %v1441_v9 = vpack.c.bf16 %v191_v4, %v188_v3  ;;  %v1885_v10 = vand.u32 4294901760, %v185_v7  ;;  %v276_v11 = vsub.f32 %v178_v0, %v188_v3  ;;  %p1631_p8 = scmp.ne.s32.totalorder %s1926_s23, %s1630_s16  ;;  %p1995_p9 = scmp.ne.s32.totalorder %s1984_s21, 0 }
  0x5b   : > { %v283_v12 = vsub.f32 %v179_v1, %v191_v4  ;;  %s1707_s13 = smov [#allocation7]  }
  0x5c   : > { %v1888_v13 = vsub.f32 %v182_v6, %v1883_v8  ;;  %1442 = vmatprep.subr.bf16.mxu0 %v1441_v9  ;;  %v1891_v14 = vsub.f32 %v185_v7, %v1885_v10  ;;  %v277_v15 = vand.u32 4294901760, %v276_v11  ;;  %p1632_p10 = pnand %p1631_p8, %p1995_p9  ;;  %s1634_s17 = sshll.u32 %s1707_s13, 4  ;;  %s1635_s17 = int_to_ptr.vmem [resolvable:$false] %s1634_s17 }
  0x5d   : > { %v284_v16 = vand.u32 4294901760, %v283_v12  ;;  %1444 = vmatpush3.bf16.msra.mxu0 %v1441_v9  ;;  %v1449_v28 = vpack.c.bf16 %v283_v12, %v276_v11  ;;  %s1636_s29 = scalar_lea.vmem %s1635_s17, 512  ;;  %p1637_p4 = scmp.lt.s32.totalorder %s1926_s23, %s1635_s17 }
  0x5e   : > { %v1894_v17 = vand.u32 4294901760, %v1888_v13  ;;  %v1897_v18 = vand.u32 4294901760, %v1891_v14  ;;  %v278_v19 = vsub.f32 %v276_v11, %v277_v15  ;;  %p1633_p1 = pneg %p1632_p10  ;;  %p1638_p0 = scmp.lt.s32.totalorder %s1636_s29, %s1630_s16 }
  0x5f   : > { %v285_v20 = vsub.f32 %v283_v12, %v284_v16  ;;  %v1457_v29 = vpack.c.bf16 %v284_v16, %v277_v15 }
  0x60   : > { %v257_v21 = vsub.f32 %v1888_v13, %v1894_v17  ;;  %v267_v22 = vsub.f32 %v1891_v14, %v1897_v18  ;;  %v279_v23 = vand.u32 4294901760, %v278_v19  ;;  %p1639_p5 = por %p1638_p0, %p1637_p4 }
  0x61   : > { %v286_v24 = vand.u32 4294901760, %v285_v20 }
  0x62   : > { %v258_v25 = vand.u32 4294901760, %v257_v21  ;;  %v268_v26 = vand.u32 4294901760, %v267_v22  ;;  %p1640_p11 = pnand %p1639_p5, %p1633_p1 }
  0x63   : > { %v1445_v27 = vpack.c.bf16 %v286_v24, %v279_v23 }
  0x64   : > { %1361 = vmatprep.mubr.f32.mxu0 %v258_v25  ;;  %1403 = vmatprep.mubr.f32.mxu1 %v258_v25 }
  0x65   : > { %1362 = vmatmul.mubr.f32.vlgmr.msra.gmra.mrb[0].mxu0 %v268_v26  ;;  %1446 = vmatprep.subr.bf16.mxu0 %v1445_v27 }
  0x66   : > { %1448 = vmatpush3.bf16.msra.mxu0 %v1445_v27  ;;  %1368 = vmatprep.mubr.f32.mxu0 %v1883_v8 }
  0x67   : > { %1450 = vmatprep.subr.bf16.mxu0 %v1449_v28 }
  0x6d   : > { %1369 = vmatmul.mubr.f32.vlgmr.msra.gmra.mrb[0].mxu0 %v1885_v10 }
  0x6e   : > { %1452 = vmatpush3.bf16.msra.mxu0 %v1449_v28  ;;  %1375 = vmatprep.mubr.f32.mxu0 %v1888_v13 }
  0x6f   : > { %1454 = vmatprep.subr.bf16.mxu0 %v1441_v9 }
  0x75   : > { %1376 = vmatmul.mubr.f32.vlgmr.msra.gmra.mrb[0].mxu0 %v1891_v14 }
  0x76   : > { %1456 = vmatpush3.bf16.msra.mxu0 %v1441_v9  ;;  %1382 = vmatprep.mubr.f32.mxu0 %v1894_v17 }
  0x77   : > { %1458 = vmatprep.subr.bf16.mxu0 %v1457_v29 }
  0x7d   : > { %1383 = vmatmul.mubr.f32.vlgmr.msra.gmra.mrb[0].mxu0 %v1897_v18 }
  0x7e   : > { %1460 = vmatpush3.bf16.msra.mxu0 %v1457_v29  ;;  %1389 = vmatprep.mubr.f32.mxu0 %v1883_v8 }
  0x7f   : > { %1462 = vmatprep.subr.bf16.mxu0 %v1441_v9 }
  0x85   : > { %1390 = vmatmul.mubr.f32.vlgmr.msra.gmra.mrb[0].mxu0 %v1885_v10 }
  0x86   : > { %1464 = vmatpush3.bf16.msra.mxu0 %v1441_v9  ;;  %1396 = vmatprep.mubr.f32.mxu0 %v1883_v8 }
  0x8d   : > { %1397 = vmatmul.mubr.f32.vlgmr.msra.gmra.mrb[0].mxu0 %v1885_v10 }
 0x160   : > { %v1398_v30 = vpop.f32.mrb[0].mxu0 }
 0x161   : > { %v690_v31 = vmax.f32 %v1398_v30, 0.0  ;;  %v679_v32 = vpop.f32.mrb[1].mxu0 }
 0x162   : > { %v689_v33 = vmax.f32 %v679_v32, 0.0 }
 0x163   : > { %v695_v34 = vand.u32 4294901760, %v690_v31 }
 0x164   : > { %v692_v35 = vand.u32 4294901760, %v689_v33 }
 0x165   : > { %v787_v36 = vsub.f32 %v690_v31, %v695_v34 }
 0x166   : > { %v1465_v37 = vpack.c.bf16 %v695_v34, %v692_v35  ;;  %v780_v38 = vsub.f32 %v689_v33, %v692_v35 }
 0x167   : > { %v788_v39 = vand.u32 4294901760, %v787_v36 }
 0x168   : > { %v781_v40 = vand.u32 4294901760, %v780_v38  ;;  %1466 = vmatprep.subr.bf16.mxu1 %v1465_v37  ;;  %v1473_v41 = vpack.c.bf16 %v787_v36, %v780_v38 }
 0x169   : > { %1468 = vmatpush3.bf16.msra.mxu1 %v1465_v37  ;;  %v789_v42 = vsub.f32 %v787_v36, %v788_v39 }
 0x16a   : > { %v782_v43 = vsub.f32 %v780_v38, %v781_v40  ;;  %v1481_v44 = vpack.c.bf16 %v788_v39, %v781_v40 }
 0x16b   : > { %v790_v45 = vand.u32 4294901760, %v789_v42 }
 0x16c   : > { %1404 = vmatmul.mubr.f32.vlgmr.msra.gmra.mrb[0].mxu1 %v268_v26  ;;  %v783_v46 = vand.u32 4294901760, %v782_v43 }
 0x16d   : > { %1410 = vmatprep.mubr.f32.mxu1 %v1883_v8 }
 0x16e   : > { %v1469_v47 = vpack.c.bf16 %v790_v45, %v783_v46 }
 0x170   : > { %1470 = vmatprep.subr.bf16.mxu1 %v1469_v47 }
 0x171   : > { %1472 = vmatpush3.bf16.msra.mxu1 %v1469_v47 }
 0x172   : > { %1474 = vmatprep.subr.bf16.mxu1 %v1473_v41 }
 0x174   : > { %1411 = vmatmul.mubr.f32.vlgmr.msra.gmra.mrb[0].mxu1 %v1885_v10 }
 0x175   : > { %1476 = vmatpush3.bf16.msra.mxu1 %v1473_v41  ;;  %1417 = vmatprep.mubr.f32.mxu1 %v1888_v13 }
 0x176   : > { %1478 = vmatprep.subr.bf16.mxu1 %v1465_v37 }
 0x17c   : > { %1418 = vmatmul.mubr.f32.vlgmr.msra.gmra.mrb[0].mxu1 %v1891_v14 }
 0x17d   : > { %1480 = vmatpush3.bf16.msra.mxu1 %v1465_v37  ;;  %1424 = vmatprep.mubr.f32.mxu1 %v1894_v17 }
 0x17e   : > { %1482 = vmatprep.subr.bf16.mxu1 %v1481_v44 }
 0x184   : > { %1425 = vmatmul.mubr.f32.vlgmr.msra.gmra.mrb[0].mxu1 %v1897_v18 }
 0x185   : > { %1484 = vmatpush3.bf16.msra.mxu1 %v1481_v44  ;;  %1431 = vmatprep.mubr.f32.mxu1 %v1883_v8 }
 0x186   : > { %1486 = vmatprep.subr.bf16.mxu1 %v1465_v37 }
 0x18c   : > { %1432 = vmatmul.mubr.f32.vlgmr.msra.gmra.mrb[0].mxu1 %v1885_v10 }
 0x18d   : > { %1488 = vmatpush3.bf16.msra.mxu1 %v1465_v37  ;;  %1438 = vmatprep.mubr.f32.mxu1 %v1883_v8 }
 0x194   : > { %1439 = vmatmul.mubr.f32.vlgmr.msra.gmra.mrb[0].mxu1 %v1885_v10 }
 0x267   : > { %v1440_v48 = vpop.f32.mrb[0].mxu1 }
 0x268   : > { %v1194_v49 = vmax.f32 %v1440_v48, 0.0  ;;  %v1183_v50 = vpop.f32.mrb[1].mxu1 }
 0x269   : > { %v1193_v51 = vmax.f32 %v1183_v50, 0.0 }
 0x26a   : > { %1196 = vst [vmem:[%s175_s20 + $0x8] sm:$0xff] %v1194_v49 }
 0x26b   : > { %1195 = vst [vmem:[%s175_s20] sm:$0xff] %v1193_v51 }
 0x26c   : > { %1643 = shalt.err (!%p1640_p11)
}
 0x26d   : > { %s1644_s27 = scalar_lea.hbm %s1931_s4, 256  ;;  %s1648_s3 = scalar_lea.hbm %s1977_s2, 512 }
 0x26e   : > { %p1645_p13 = scmp.ne.s32.totalorder %s1931_s4, %s1644_s27  ;;  %p1649_p12 = scmp.lt.u32.totalorder %s1931_s4, %s1977_s2 }
 0x26f   : > { %p1650_p7 = scmp.lt.u32.totalorder %s1648_s3, %s1644_s27  ;;  %p1652_p8 = scmp.lt.u32.totalorder %s1644_s27, %s1931_s4 }
 0x270   : > { %p1646_p2 = pnand %p1645_p13, %p1995_p9 }
 0x271   : > { %p1651_p3 = por %p1650_p7, %p1649_p12 }
 0x272   : > { %p1647_p6 = pneg %p1646_p2 }
 0x273   : > { %p1653_p10 = por %p1652_p8, %p1651_p3 }
 0x275   : > { %p1654_p1 = pnand %p1653_p10, %p1647_p6 }
 0x277   : > { %1657 = shalt.err (!%p1654_p1)
}
 0x278   : > { %s1708_s6 = smov 128   ;;  %s1709_s8 = smov 256  }
 0x279   : > { %s1710_s20 = smov 8  }
 0x27a   : > { %1515 = dma.vmem_to_hbm [thread:$0]  (%p1995_p9), %s1926_s23, 256, %s1931_s4, %s1198_s7, %s1708_s6, %s1709_s8, %s1710_s20  }
 0x27b PF: > { %s1225_s14 = sand.u32 1, %s1688_s9   ;;  %p1996_p4 = scmp.ne.s32.totalorder %s1985_s22, 0 }
 0x27c   : > { %p1997_p0 = scmp.ge.s32.totalorder %s1700_s12, 2  ;;  %s1226_s26 = scalar_lea.sflag [#allocation4], %s1225_s14 }
 0x27e   : > { %p1526_p5 = pnand %p1997_p0, %p1996_p4 }
 0x280   : > { %1683 = dma.done.wait (!%p1526_p5), %s1226_s26, 256  }
 0x281   : > { %1685 = vsyncadd (!%p1526_p5), %s1226_s26, 4294967040  ;;  %p16_p11 = scmp.ge.s32.totalorder %s1751_s15, 4   ;;  %s1998_s9 = smov %s1692_s10 }
 0x282   : > { %s1999_s10 = smov %s1696_s11  ;;  %s2000_s11 = smov %s1763_s18 }
 0x283   : > { %s2001_s12 = smov %s1751_s15  ;;  %18 = sbr.rel (!%p16_p11) target bundleno = 6 (0x6), region = 78 }
 0x28a   :  { %1231 = vsyncpa [#allocation3], 1 }
 0x28b   :  { %1233 = vsyncpa [#allocation3 + $0x1], 1 }
 0x28c   :  { %1234 = vsyncpa [#allocation6], 1 }
 0x28d   :  { %1236 = vsyncpa [#allocation6 + $0x1], 1 }
 0x28e   :  { %1237 = vsyncpa [#allocation4], 1 }
 0x28f   :  { %1239 = vsyncpa [#allocation4 + $0x1], 1 }

</bundles_post_ra>
